<compile_context>
chip_gen: v7x
topology: tpu7x:2x2x1
jax: 0.10.0
libtpu: 0.0.40
codegen_flags: <defaults>
</compile_context>

<pallas_src>
import numpy as np
import jax
import jax.numpy as jnp
from jax.experimental import pallas as pl
from jax.experimental.pallas import tpu as pltpu


def _resized_hw(h, w, size):
    """torchvision F.resize with an int size: shorter side -> size, keep aspect."""
    if h <= w:
        return size, int(size * w / h)
    return int(size * h / w), size


def _resize_weights(in_size, out_size, crop_start, crop_len, antialias):
    """Rows [crop_start, crop_start+crop_len) of the (out_size x in_size) bilinear
    resize matrix.  antialias=False matches F.interpolate tensor-path semantics
    (half-pixel centers, negative-source clamp); antialias=True uses the PIL-style
    widened triangle filter of torchvision's antialiased resize."""
    out_idx = np.arange(crop_start, crop_start + crop_len, dtype=np.float64)
    scale = in_size / out_size
    mat = np.zeros((crop_len, in_size), dtype=np.float64)
    if antialias and scale > 1.0:
        support = scale                      # bilinear half-support (=1) * scale
        inv = 1.0 / scale
        for r, i in enumerate(out_idx):
            center = (i + 0.5) * scale
            lo = max(int(np.floor(center - support + 0.5)), 0)
            hi = min(int(np.ceil(center + support + 0.5)), in_size)
            j = np.arange(lo, hi, dtype=np.float64)
            w = np.clip(1.0 - np.abs((j + 0.5 - center) * inv), 0.0, None)
            s = w.sum()
            if s > 0.0:
                w /= s
            mat[r, lo:hi] = w
    else:
        src = np.clip((out_idx + 0.5) * scale - 0.5, 0.0, None)
        i0 = np.clip(np.floor(src).astype(np.int64), 0, in_size - 1)
        i1 = np.clip(i0 + 1, 0, in_size - 1)
        w1 = np.clip(src - np.floor(src), 0.0, 1.0)
        rows = np.arange(crop_len)
        mat[rows, i0] += 1.0 - w1
        mat[rows, i1] += w1
    return mat.astype(np.float32)


def _vmem_capacity_bytes():
    try:
        return int(pltpu.get_tpu_info().vmem_capacity_bytes)
    except Exception:
        return 64 * 2**20        # conservative default (v7x per-TensorCore VMEM)


def _make_kernel(bblk, C, Hin, crop, alphas, betas, cdtype):
    """Kernel closure; alphas/betas are Python floats baked as f32 immediates."""
    def kernel(rh_ref, rwt_ref, x_ref, o_ref):
        rh = rh_ref[...]                      # (crop, Hin)   compute dtype
        rwt = rwt_ref[...]                    # (Win, crop)   compute dtype
        for b in range(bblk):                 # static loop over images in the block
            xb = x_ref[b]                     # (C*Hin, Win)  f32 or uint8
            if jnp.issubdtype(xb.dtype, jnp.integer):
                xb = xb.astype(jnp.int32)     # u8 -> i32 zero-extend (exact 0..255)
            xb = xb.astype(jnp.float32).astype(cdtype)
            # Width resize + crop: one large-M matmul (M = C*Hin), f32 accumulation.
            tmp = jnp.dot(xb, rwt, preferred_element_type=jnp.float32)   # (C*Hin, crop)
            tmp = tmp.astype(cdtype)
            for c in range(C):                # static per-channel height matmul
                sl = tmp[c * Hin:(c + 1) * Hin, :]                        # (Hin, crop)
                res = jnp.dot(rh, sl, preferred_element_type=jnp.float32)  # (crop, crop)
                # Exact f32 normalize epilogue (1/std and -mean/std as immediates).
                o_ref[b, c * crop:(c + 1) * crop, :] = (
                    res * alphas[c] + betas[c]).astype(o_ref.dtype)
    return kernel


def image_classification_forward(img, *, crop_size, resize_size=256,
                                 mean=(0.485, 0.456, 0.406),
                                 std=(0.229, 0.224, 0.225),
                                 antialias=False,
                                 compute_dtype=jnp.bfloat16,
                                 out_dtype=jnp.float32,
                                 max_images_per_step=8):
    squeeze = (img.ndim == 3)
    if squeeze:
        img = img[None]
    B, C, Hin, Win = img.shape
    assert len(mean) == C and len(std) == C

    # convert_image_dtype: uint8 -> /255 (folded into epilogue); float -> identity.
    if img.dtype == jnp.uint8:
        in_scale = 1.0 / 255.0
    else:
        if img.dtype != jnp.float32:
            img = img.astype(jnp.float32)
        in_scale = 1.0

    Hr, Wr = _resized_hw(Hin, Win, resize_size)
    assert Hr >= crop_size and Wr >= crop_size, "crop larger than resized image not supported"
    top = int(round((Hr - crop_size) / 2.0))
    left = int(round((Wr - crop_size) / 2.0))

    # Un-replicated interpolation matrices restricted to the crop window.
    rh_np = _resize_weights(Hin, Hr, top, crop_size, antialias)          # (crop, Hin)
    rwt_np = _resize_weights(Win, Wr, left, crop_size, antialias).T      # (Win, crop)
    rh_j = jnp.asarray(rh_np, dtype=compute_dtype)
    rwt_j = jnp.asarray(np.ascontiguousarray(rwt_np), dtype=compute_dtype)

    # Exact f32 epilogue FMA constants.
    alphas = [float(in_scale / s) for s in std]
    betas = [float(-m / s) for m, s in zip(mean, std)]

    # ---- VMEM budget -> images per grid step (Bblk) and vmem_limit -----------------
    cap = _vmem_capacity_bytes()
    budget = int(0.75 * cap)
    cbytes = np.dtype(compute_dtype).itemsize
    ibytes = np.dtype(img.dtype).itemsize
    obytes = np.dtype(out_dtype).itemsize
    per_image = (2 * C * Hin * Win * ibytes                    # double-buffered input block
                 + 2 * C * crop_size * crop_size * obytes      # double-buffered output block
                 + C * Hin * Win * cbytes                      # in-kernel cast copy
                 + C * Hin * crop_size * (4 + cbytes)          # f32 width-matmul result + cast
                 + 2 * crop_size * crop_size * 4)              # per-channel result / epilogue
    fixed = 2 * (crop_size * Hin + Win * crop_size) * cbytes   # rh + rwt (tiny, un-replicated)

    bblk = 1
    for cand in range(1, min(B, max_images_per_step) + 1):
        if B % cand == 0 and fixed + cand * per_image <= budget:
            bblk = cand
    vmem_needed = fixed + bblk * per_image
    vmem_limit = int(min(max(int(1.15 * vmem_needed), 32 * 2**20), int(0.8 * cap)))

    # Free metadata reshapes: image -> (B, C*Hin, Win); output -> (B, C*crop, crop).
    img2 = img.reshape(B, C * Hin, Win)
    kernel = _make_kernel(bblk, C, Hin, crop_size, alphas, betas, compute_dtype)

    out2 = pl.pallas_call(
        kernel,
        out_shape=jax.ShapeDtypeStruct((B, C * crop_size, crop_size), out_dtype),
        grid_spec=pltpu.PrefetchScalarGridSpec(
            num_scalar_prefetch=0,
            grid=(B // bblk,),
            in_specs=[
                # Constant-index inputs: block == full array (exempt from (8,128) rule).
                pl.BlockSpec((crop_size, Hin), lambda b: (0, 0)),
                pl.BlockSpec((Win, crop_size), lambda b: (0, 0)),
                pl.BlockSpec((bblk, C * Hin, Win), lambda b: (b, 0, 0)),
            ],
            out_specs=pl.BlockSpec((bblk, C * crop_size, crop_size),
                                   lambda b: (b, 0, 0)),
        ),
        compiler_params=pltpu.CompilerParams(
            dimension_semantics=("parallel",),
            vmem_limit_bytes=vmem_limit),
    )(rh_j, rwt_j, img2)

    out = out2.reshape(B, C, crop_size, crop_size)
    return out[0] if squeeze else out


# ----------------------------- numpy references ------------------------------------
def _reference_gather(img, *, crop_size, resize_size, mean, std, in_scale=1.0):
    """Independent reference: per-pixel bilinear gather (no antialias) + crop + norm."""
    x = np.asarray(img, np.float64)
    B, C, Hin, Win = x.shape
    Hr, Wr = _resized_hw(Hin, Win, resize_size)

    def coords(in_size, out_size):
        src = np.clip((np.arange(out_size) + 0.5) * (in_size / out_size) - 0.5, 0.0, None)
        i0 = np.clip(np.floor(src).astype(np.int64), 0, in_size - 1)
        i1 = np.clip(i0 + 1, 0, in_size - 1)
        w1 = np.clip(src - np.floor(src), 0.0, 1.0)
        return i0, i1, w1

    h0, h1, hw = coords(Hin, Hr)
    w0, w1, ww = coords(Win, Wr)
    t = (x[:, :, h0, :] * (1 - hw)[None, None, :, None]
         + x[:, :, h1, :] * hw[None, None, :, None])
    res = (t[:, :, :, w0] * (1 - ww)[None, None, None, :]
           + t[:, :, :, w1] * ww[None, None, None, :])
    ti = int(round((Hr - crop_size) / 2.0))
    li = int(round((Wr - crop_size) / 2.0))
    res = res[:, :, ti:ti + crop_size, li:li + crop_size]
    m = np.asarray(mean)[None, :, None, None]
    s = np.asarray(std)[None, :, None, None]
    return ((res * in_scale - m) / s).astype(np.float32)


def _reference_matrix(img, *, crop_size, resize_size, mean, std, antialias, in_scale=1.0):
    """Reference via full (uncropped) resize matrices applied in float64; exercises the
    kernel's crop-window restriction, matmul order and epilogue."""
    x = np.asarray(img, np.float64)
    B, C, Hin, Win = x.shape
    Hr, Wr = _resized_hw(Hin, Win, resize_size)
    Rh = _resize_weights(Hin, Hr, 0, Hr, antialias).astype(np.float64)
    Rw = _resize_weights(Win, Wr, 0, Wr, antialias).astype(np.float64)
    res = np.einsum('mh,bchw->bcmw', Rh, x)
    res = np.einsum('bcmw,kw->bcmk', res, Rw)
    ti = int(round((Hr - crop_size) / 2.0))
    li = int(round((Wr - crop_size) / 2.0))
    res = res[:, :, ti:ti + crop_size, li:li + crop_size]
    m = np.asarray(mean)[None, :, None, None]
    s = np.asarray(std)[None, :, None, None]
    return ((res * in_scale - m) / s).astype(np.float32)


if __name__ == "__main__":
    B, C, Hin, Win = 2, 3, 24, 32
    crop_size, resize_size = 8, 16
    mean = (0.485, 0.456, 0.406)
    std = (0.229, 0.224, 0.225)

    key = jax.random.PRNGKey(0)
    kf, ki = jax.random.split(key)
    img_f32 = jax.random.uniform(kf, (B, C, Hin, Win), dtype=jnp.float32)   # float in [0,1]
    img_u8 = jax.random.randint(ki, (B, C, Hin, Win), 0, 256,
                                dtype=jnp.int32).astype(jnp.uint8)

    # 1) float input, no antialias, f32 compute: tight check vs independent gather ref.
    ref = _reference_gather(np.asarray(img_f32), crop_size=crop_size,
                            resize_size=resize_size, mean=mean, std=std)
    out = image_classification_forward(img_f32, crop_size=crop_size, resize_size=resize_size,
                                       mean=mean, std=std, antialias=False,
                                       compute_dtype=jnp.float32)
    out = jax.block_until_ready(out)
    np.testing.assert_allclose(np.asarray(out), ref, rtol=1e-4, atol=1e-4)

    # 2) bf16 compute + bf16 output (fast path): looser tolerance (bf16 quantization).
    out_bf = image_classification_forward(img_f32, crop_size=crop_size, resize_size=resize_size,
                                          mean=mean, std=std, antialias=False,
                                          compute_dtype=jnp.bfloat16, out_dtype=jnp.bfloat16)
    out_bf = jax.block_until_ready(out_bf)
    np.testing.assert_allclose(np.asarray(out_bf.astype(jnp.float32)), ref,
                               rtol=2e-2, atol=8e-2)

    # 3) uint8 input + antialiased resize (production-like config), f32 compute.
    ref_aa = _reference_matrix(np.asarray(img_u8).astype(np.float64), crop_size=crop_size,
                               resize_size=resize_size, mean=mean, std=std,
                               antialias=True, in_scale=1.0 / 255.0)
    out_u8 = image_classification_forward(img_u8, crop_size=crop_size, resize_size=resize_size,
                                          mean=mean, std=std, antialias=True,
                                          compute_dtype=jnp.float32)
    out_u8 = jax.block_until_ready(out_u8)
    np.testing.assert_allclose(np.asarray(out_u8), ref_aa, rtol=1e-3, atol=1e-3)

    print("KERNEL_OK")
</pallas_src>

<mosaic_0001>
module attributes {stable_mosaic.version = 11 : i64} {
  func.func @kernel(%arg0: i32, %arg1: memref<8x24xf32, #tpu.memory_space<vmem>>, %arg2: memref<32x8xf32, #tpu.memory_space<vmem>>, %arg3: memref<2x72x32xf32, #tpu.memory_space<vmem>>, %arg4: memref<2x24x8xf32, #tpu.memory_space<vmem>>) attributes {dimension_semantics = [#tpu.dimension_semantics<parallel>], iteration_bounds = array<i64: 1>, scalar_prefetch = 0 : i64, scratch_operands = 0 : i64, tpu.core_type = #tpu.core_type<tc>, window_params = [{pipeline_mode = #tpu.pipeline_mode<synchronous>, transform_indices = @transform_0, window_bounds = array<i64: 8, 24>}, {pipeline_mode = #tpu.pipeline_mode<synchronous>, transform_indices = @transform_1, window_bounds = array<i64: 32, 8>}, {transform_indices = @transform_2, window_bounds = array<i64: 2, 72, 32>}, {transform_indices = @transform_3, window_bounds = array<i64: 2, 24, 8>}]} {
    %c0 = arith.constant 0 : index
    %c0_0 = arith.constant 0 : index
    %0 = vector.load %arg1[%c0, %c0_0] : memref<8x24xf32, #tpu.memory_space<vmem>>, vector<8x24xf32>
    %c0_1 = arith.constant 0 : index
    %c0_2 = arith.constant 0 : index
    %1 = vector.load %arg2[%c0_1, %c0_2] : memref<32x8xf32, #tpu.memory_space<vmem>>, vector<32x8xf32>
    %c0_3 = arith.constant 0 : index
    %c0_4 = arith.constant 0 : index
    %c0_5 = arith.constant 0 : index
    %2 = vector.load %arg3[%c0_3, %c0_4, %c0_5] : memref<2x72x32xf32, #tpu.memory_space<vmem>>, vector<1x72x32xf32>
    %3 = vector.shape_cast %2 : vector<1x72x32xf32> to vector<72x32xf32>
    %cst = arith.constant dense<0.000000e+00> : vector<72x8xf32>
    %4 = tpu.matmul %3, %1, %cst {dimension_numbers = #tpu.dot_dimension_numbers<[1], [0], [0], [1], [0, 0, 1, 1], [], []>} : vector<72x32xf32>, vector<32x8xf32>, vector<72x8xf32> -> vector<72x8xf32>
    %5 = vector.extract_strided_slice %4 {offsets = [0, 0], sizes = [24, 8], strides = [1, 1]} : vector<72x8xf32> to vector<24x8xf32>
    %cst_6 = arith.constant dense<0.000000e+00> : vector<8x8xf32>
    %6 = tpu.matmul %0, %5, %cst_6 {dimension_numbers = #tpu.dot_dimension_numbers<[1], [0], [0], [1], [0, 0, 1, 1], [], []>} : vector<8x24xf32>, vector<24x8xf32>, vector<8x8xf32> -> vector<8x8xf32>
    %cst_7 = arith.constant 4.36681223 : f32
    %7 = vector.broadcast %cst_7 : f32 to vector<8x8xf32>
    %8 = arith.mulf %6, %7 : vector<8x8xf32>
    %cst_8 = arith.constant -2.11790395 : f32
    %9 = vector.broadcast %cst_8 : f32 to vector<8x8xf32>
    %10 = arith.addf %8, %9 : vector<8x8xf32>
    %c0_9 = arith.constant 0 : index
    %c0_10 = arith.constant 0 : index
    %c0_11 = arith.constant 0 : index
    %11 = vector.load %arg4[%c0_9, %c0_10, %c0_11] : memref<2x24x8xf32, #tpu.memory_space<vmem>>, vector<1x8x8xf32>
    %12 = vector.shape_cast %11 : vector<1x8x8xf32> to vector<8x8xf32>
    %13 = vector.shape_cast %10 : vector<8x8xf32> to vector<1x8x8xf32>
    tpu.vector_store %arg4[%c0_9, %c0_10, %c0_11], %13 {strides = array<i32>} : memref<2x24x8xf32, #tpu.memory_space<vmem>>, vector<1x8x8xf32>,
    %14 = vector.extract_strided_slice %4 {offsets = [24, 0], sizes = [24, 8], strides = [1, 1]} : vector<72x8xf32> to vector<24x8xf32>
    %cst_12 = arith.constant dense<0.000000e+00> : vector<8x8xf32>
    %15 = tpu.matmul %0, %14, %cst_12 {dimension_numbers = #tpu.dot_dimension_numbers<[1], [0], [0], [1], [0, 0, 1, 1], [], []>} : vector<8x24xf32>, vector<24x8xf32>, vector<8x8xf32> -> vector<8x8xf32>
    %cst_13 = arith.constant 4.46428585 : f32
    %16 = vector.broadcast %cst_13 : f32 to vector<8x8xf32>
    %17 = arith.mulf %15, %16 : vector<8x8xf32>
    %cst_14 = arith.constant -2.03571439 : f32
    %18 = vector.broadcast %cst_14 : f32 to vector<8x8xf32>
    %19 = arith.addf %17, %18 : vector<8x8xf32>
    %c0_15 = arith.constant 0 : index
    %c8 = arith.constant 8 : index
    %c0_16 = arith.constant 0 : index
    %20 = vector.load %arg4[%c0_15, %c8, %c0_16] : memref<2x24x8xf32, #tpu.memory_space<vmem>>, vector<1x8x8xf32>
    %21 = vector.shape_cast %20 : vector<1x8x8xf32> to vector<8x8xf32>
    %22 = vector.shape_cast %19 : vector<8x8xf32> to vector<1x8x8xf32>
    tpu.vector_store %arg4[%c0_15, %c8, %c0_16], %22 {strides = array<i32>} : memref<2x24x8xf32, #tpu.memory_space<vmem>>, vector<1x8x8xf32>,
    %23 = vector.extract_strided_slice %4 {offsets = [48, 0], sizes = [24, 8], strides = [1, 1]} : vector<72x8xf32> to vector<24x8xf32>
    %cst_17 = arith.constant dense<0.000000e+00> : vector<8x8xf32>
    %24 = tpu.matmul %0, %23, %cst_17 {dimension_numbers = #tpu.dot_dimension_numbers<[1], [0], [0], [1], [0, 0, 1, 1], [], []>} : vector<8x24xf32>, vector<24x8xf32>, vector<8x8xf32> -> vector<8x8xf32>
    %cst_18 = arith.constant 4.44444466 : f32
    %25 = vector.broadcast %cst_18 : f32 to vector<8x8xf32>
    %26 = arith.mulf %24, %25 : vector<8x8xf32>
    %cst_19 = arith.constant -1.80444443 : f32
    %27 = vector.broadcast %cst_19 : f32 to vector<8x8xf32>
    %28 = arith.addf %26, %27 : vector<8x8xf32>
    %c0_20 = arith.constant 0 : index
    %c16 = arith.constant 16 : index
    %c0_21 = arith.constant 0 : index
    %29 = vector.load %arg4[%c0_20, %c16, %c0_21] : memref<2x24x8xf32, #tpu.memory_space<vmem>>, vector<1x8x8xf32>
    %30 = vector.shape_cast %29 : vector<1x8x8xf32> to vector<8x8xf32>
    %31 = vector.shape_cast %28 : vector<8x8xf32> to vector<1x8x8xf32>
    tpu.vector_store %arg4[%c0_20, %c16, %c0_21], %31 {strides = array<i32>} : memref<2x24x8xf32, #tpu.memory_space<vmem>>, vector<1x8x8xf32>,
    %c1 = arith.constant 1 : index
    %c0_22 = arith.constant 0 : index
    %c0_23 = arith.constant 0 : index
    %32 = vector.load %arg3[%c1, %c0_22, %c0_23] : memref<2x72x32xf32, #tpu.memory_space<vmem>>, vector<1x72x32xf32>
    %33 = vector.shape_cast %32 : vector<1x72x32xf32> to vector<72x32xf32>
    %cst_24 = arith.constant dense<0.000000e+00> : vector<72x8xf32>
    %34 = tpu.matmul %33, %1, %cst_24 {dimension_numbers = #tpu.dot_dimension_numbers<[1], [0], [0], [1], [0, 0, 1, 1], [], []>} : vector<72x32xf32>, vector<32x8xf32>, vector<72x8xf32> -> vector<72x8xf32>
    %35 = vector.extract_strided_slice %34 {offsets = [0, 0], sizes = [24, 8], strides = [1, 1]} : vector<72x8xf32> to vector<24x8xf32>
    %cst_25 = arith.constant dense<0.000000e+00> : vector<8x8xf32>
    %36 = tpu.matmul %0, %35, %cst_25 {dimension_numbers = #tpu.dot_dimension_numbers<[1], [0], [0], [1], [0, 0, 1, 1], [], []>} : vector<8x24xf32>, vector<24x8xf32>, vector<8x8xf32> -> vector<8x8xf32>
    %cst_26 = arith.constant 4.36681223 : f32
    %37 = vector.broadcast %cst_26 : f32 to vector<8x8xf32>
    %38 = arith.mulf %36, %37 : vector<8x8xf32>
    %cst_27 = arith.constant -2.11790395 : f32
    %39 = vector.broadcast %cst_27 : f32 to vector<8x8xf32>
    %40 = arith.addf %38, %39 : vector<8x8xf32>
    %c1_28 = arith.constant 1 : index
    %c0_29 = arith.constant 0 : index
    %c0_30 = arith.constant 0 : index
    %41 = vector.load %arg4[%c1_28, %c0_29, %c0_30] : memref<2x24x8xf32, #tpu.memory_space<vmem>>, vector<1x8x8xf32>
    %42 = vector.shape_cast %41 : vector<1x8x8xf32> to vector<8x8xf32>
    %43 = vector.shape_cast %40 : vector<8x8xf32> to vector<1x8x8xf32>
    tpu.vector_store %arg4[%c1_28, %c0_29, %c0_30], %43 {strides = array<i32>} : memref<2x24x8xf32, #tpu.memory_space<vmem>>, vector<1x8x8xf32>,
    %44 = vector.extract_strided_slice %34 {offsets = [24, 0], sizes = [24, 8], strides = [1, 1]} : vector<72x8xf32> to vector<24x8xf32>
    %cst_31 = arith.constant dense<0.000000e+00> : vector<8x8xf32>
    %45 = tpu.matmul %0, %44, %cst_31 {dimension_numbers = #tpu.dot_dimension_numbers<[1], [0], [0], [1], [0, 0, 1, 1], [], []>} : vector<8x24xf32>, vector<24x8xf32>, vector<8x8xf32> -> vector<8x8xf32>
    %cst_32 = arith.constant 4.46428585 : f32
    %46 = vector.broadcast %cst_32 : f32 to vector<8x8xf32>
    %47 = arith.mulf %45, %46 : vector<8x8xf32>
    %cst_33 = arith.constant -2.03571439 : f32
    %48 = vector.broadcast %cst_33 : f32 to vector<8x8xf32>
    %49 = arith.addf %47, %48 : vector<8x8xf32>
    %c1_34 = arith.constant 1 : index
    %c8_35 = arith.constant 8 : index
    %c0_36 = arith.constant 0 : index
    %50 = vector.load %arg4[%c1_34, %c8_35, %c0_36] : memref<2x24x8xf32, #tpu.memory_space<vmem>>, vector<1x8x8xf32>
    %51 = vector.shape_cast %50 : vector<1x8x8xf32> to vector<8x8xf32>
    %52 = vector.shape_cast %49 : vector<8x8xf32> to vector<1x8x8xf32>
    tpu.vector_store %arg4[%c1_34, %c8_35, %c0_36], %52 {strides = array<i32>} : memref<2x24x8xf32, #tpu.memory_space<vmem>>, vector<1x8x8xf32>,
    %53 = vector.extract_strided_slice %34 {offsets = [48, 0], sizes = [24, 8], strides = [1, 1]} : vector<72x8xf32> to vector<24x8xf32>
    %cst_37 = arith.constant dense<0.000000e+00> : vector<8x8xf32>
    %54 = tpu.matmul %0, %53, %cst_37 {dimension_numbers = #tpu.dot_dimension_numbers<[1], [0], [0], [1], [0, 0, 1, 1], [], []>} : vector<8x24xf32>, vector<24x8xf32>, vector<8x8xf32> -> vector<8x8xf32>
    %cst_38 = arith.constant 4.44444466 : f32
    %55 = vector.broadcast %cst_38 : f32 to vector<8x8xf32>
    %56 = arith.mulf %54, %55 : vector<8x8xf32>
    %cst_39 = arith.constant -1.80444443 : f32
    %57 = vector.broadcast %cst_39 : f32 to vector<8x8xf32>
    %58 = arith.addf %56, %57 : vector<8x8xf32>
    %c1_40 = arith.constant 1 : index
    %c16_41 = arith.constant 16 : index
    %c0_42 = arith.constant 0 : index
    %59 = vector.load %arg4[%c1_40, %c16_41, %c0_42] : memref<2x24x8xf32, #tpu.memory_space<vmem>>, vector<1x8x8xf32>
    %60 = vector.shape_cast %59 : vector<1x8x8xf32> to vector<8x8xf32>
    %61 = vector.shape_cast %58 : vector<8x8xf32> to vector<1x8x8xf32>
    tpu.vector_store %arg4[%c1_40, %c16_41, %c0_42], %61 {strides = array<i32>} : memref<2x24x8xf32, #tpu.memory_space<vmem>>, vector<1x8x8xf32>,
    return
  }
  func.func @transform_0(%arg0: i32) -> (i32, i32) {
    %c0_i32 = arith.constant 0 : i32
    %c0_i32_0 = arith.constant 0 : i32
    %c0_i32_1 = arith.constant 0 : i32
    return %c0_i32, %c0_i32_0 : i32, i32
  }
  func.func @transform_1(%arg0: i32) -> (i32, i32) {
    %c0_i32 = arith.constant 0 : i32
    %c0_i32_0 = arith.constant 0 : i32
    %c0_i32_1 = arith.constant 0 : i32
    return %c0_i32, %c0_i32_0 : i32, i32
  }
  func.func @transform_2(%arg0: i32) -> (i32, i32, i32) {
    %c0_i32 = arith.constant 0 : i32
    %c0_i32_0 = arith.constant 0 : i32
    %c0_i32_1 = arith.constant 0 : i32
    return %arg0, %c0_i32, %c0_i32_0 : i32, i32, i32
  }
  func.func @transform_3(%arg0: i32) -> (i32, i32, i32) {
    %c0_i32 = arith.constant 0 : i32
    %c0_i32_0 = arith.constant 0 : i32
    %c0_i32_1 = arith.constant 0 : i32
    return %arg0, %c0_i32, %c0_i32_0 : i32, i32, i32
  }
}

</mosaic_0001>

<bundles_post_ra>
// kernel: tpu_custom_call.1
= control target key start
LH: loop header
LB: loop body
LE: loop exit
PB: predicated region body
PF: predicated region fallthrough
CT: control target
= control target key end

     0   :  { %v1004_v0 = vmov 0.0|0.0   ;;  %vm1005_vm0 = vmmov 0   ;;  %v1006_v4 = vmov 0.0   ;;  %vm28_vm1 = vcmask 261120   ;;  %s1224_s1 = inlined_call_operand.vmem [shape: f32[32,8], index: 1, kind: input, shape index: {}]   ;;  %s1225_s2 = inlined_call_operand.vmem [shape: f32[2,72,32], index: 2, kind: input, shape index: {}]   ;;  %s1226_s0 = inlined_call_operand.vmem [shape: f32[8,24], index: 0, kind: input, shape index: {}]   ;;  %s1227_s3 = inlined_call_operand.vmem [shape: f32[2,24,8], index: 3, kind: output, shape index: {}]  }
   0x1   :  { %971 = vmatprep.subr.bf16.mxu0 %v1004_v0  ;;  %v15_v1 = vld [vmem:[%s1224_s1] sm:$0xff]  ;;  %v16_v2 = vld [vmem:[%s1224_s1 + $0x8] sm:$0xff]  ;;  %v17_v3 = vld [vmem:[%s1224_s1 + $0x10] sm:$0xff]  ;;  %855 = vmatprep.mubr.msk.f32.mxu0 %vm1005_vm0, %v1006_v4  ;;  %vm166_vm2 = vcmask 195584   ;;  %vm242_vm3 = vcmask 64512  }
   0x2   :  { %v1039_v5 = vpack.c.bf16 %v16_v2, %v15_v1  ;;  %v18_v6 = vld [vmem:[%s1224_s1 + $0x18] sm:$0xff]  ;;  %977 = vmatprep.subr.bf16.mxu1 %v1004_v0  ;;  %888 = vmatprep.mubr.msk.f32.mxu1 %vm1005_vm0, %v1006_v4  ;;  %v19_v8 = vld [vmem:[%s1225_s2] sm:$0xff]  ;;  %v20_v9 = vld [vmem:[%s1225_s2 + $0x8] sm:$0xff] }
   0x3   :  { %v1048_v7 = vpack.c.bf16 %v18_v6, %v17_v3  ;;  %v21_v10 = vld [vmem:[%s1225_s2 + $0x10] sm:$0xff]  ;;  %v22_v11 = vld [vmem:[%s1225_s2 + $0x18] sm:$0xff]  ;;  %v23_v12 = vld [vmem:[%s1225_s2 + $0x20] sm:$0xff] }
   0x4   :  { %973 = vmatpush3.bf16.msra.mxu0 %v1039_v5  ;;  %v24_v13 = vld [vmem:[%s1225_s2 + $0x28] sm:$0xff]  ;;  %v25_v14 = vld [vmem:[%s1225_s2 + $0x30] sm:$0xff]  ;;  %v26_v15 = vld [vmem:[%s1225_s2 + $0x38] sm:$0xff] }
   0x5   :  { %974 = vmatprep.subr.bf16.mxu0 %v1004_v0  ;;  %v27_v16 = vld [vmem:[%s1225_s2 + $0x40] sm:$0xff]  ;;  %v773_v39 = vld [vmem:[%s1225_s2 + $0x48] sm:$0xff]  ;;  %v774_v40 = vld [vmem:[%s1225_s2 + $0x50] sm:$0xff] }
   0x6   :  { %v1111_v24 = vld [vmem:[%s1226_s0] sm:$0xff]  ;;  %v775_v41 = vld [vmem:[%s1225_s2 + $0x58] sm:$0xff]  ;;  %v777_v43 = vld [vmem:[%s1225_s2 + $0x68] sm:$0xff] }
   0x7   :  { %v776_v42 = vld [vmem:[%s1225_s2 + $0x60] sm:$0xff]  ;;  %v778_v44 = vld [vmem:[%s1225_s2 + $0x70] sm:$0xff]  ;;  %v779_v45 = vld [vmem:[%s1225_s2 + $0x78] sm:$0xff] }
   0x8   :  { %976 = vmatpush3.bf16.msra.mxu0 %v1048_v7  ;;  %v780_v46 = vld [vmem:[%s1225_s2 + $0x80] sm:$0xff]  ;;  %v781_v47 = vld [vmem:[%s1225_s2 + $0x88] sm:$0xff] }
   0x9   :  { %992 = vmatprep.subr.bf16.mxu0 %v1004_v0 }
   0xb   :  { %856 = vmatmul.mubr.msk.f32.vlgmr.msra.gmra.mrb[0].mxu0 %vm28_vm1, %v19_v8 }
   0xc   :  { %858 = vmatprep.mubr.msk.f32.mxu0 %vm1005_vm0, %v1006_v4 }
   0xf   :  { %859 = vmatmul.mubr.msk.f32.gmra.mrb[2].mxu0 %vm28_vm1, %v20_v9 }
  0x10   :  { %861 = vmatprep.mubr.msk.f32.mxu0 %vm1005_vm0, %v1006_v4 }
  0x13   :  { %862 = vmatmul.mubr.msk.f32.gmra.mrb[4].mxu0 %vm28_vm1, %v21_v10 }
  0x14   :  { %864 = vmatprep.mubr.msk.f32.mxu0 %vm1005_vm0, %v1006_v4 }
  0x17   :  { %865 = vmatmul.mubr.msk.f32.gmra.mrb[6].mxu0 %vm28_vm1, %v22_v11 }
  0x18   :  { %867 = vmatprep.mubr.msk.f32.mxu0 %vm1005_vm0, %v1006_v4 }
  0x1b   :  { %868 = vmatmul.mubr.msk.f32.gmra.mrb[8].mxu0 %vm28_vm1, %v23_v12 }
  0x1c   :  { %870 = vmatprep.mubr.msk.f32.mxu0 %vm1005_vm0, %v1006_v4 }
  0x1f   :  { %871 = vmatmul.mubr.msk.f32.gmra.mrb[10].mxu0 %vm28_vm1, %v24_v13 }
  0x20   :  { %873 = vmatprep.mubr.msk.f32.mxu0 %vm1005_vm0, %v1006_v4 }
  0x23   :  { %874 = vmatmul.mubr.msk.f32.gmra.mrb[12].mxu0 %vm28_vm1, %v25_v14 }
  0x24   :  { %876 = vmatprep.mubr.msk.f32.mxu0 %vm1005_vm0, %v1006_v4 }
  0x27   :  { %877 = vmatmul.mubr.msk.f32.gmra.mrb[14].mxu0 %vm28_vm1, %v26_v15 }
  0x28   :  { %879 = vmatprep.mubr.msk.f32.mxu0 %vm1005_vm0, %v1006_v4 }
  0x2b   :  { %880 = vmatmul.mubr.msk.f32.gmra.mrb[16].mxu0 %vm28_vm1, %v27_v16 }
  0x2c   :  { %950 = vmatprep.mubr.msk.f32.mxu0 %vm1005_vm0, %v1006_v4 }
  0xde   :  { %v122_v17 = vpop.f32.mrb[0].mxu0 }
  0xdf   :  { %v857_v18 = vpop.f32.mrb[1].mxu0 }
  0xe2   :  { %v127_v19 = vpop.f32.mrb[2].mxu0 }
  0xe3   :  { %v978_v20 = vpack.c.bf16 %v127_v19, %v122_v17  ;;  %v860_v21 = vpop.f32.mrb[3].mxu0 }
  0xe5   :  { %979 = vmatpush3.bf16.msra.mxu1 %v978_v20 }
  0xe6   :  { %v132_v22 = vpop.f32.mrb[4].mxu0  ;;  %886 = vmatprep.subr.mxu1 %v1006_v4 }
  0xe7   :  { %v863_v23 = vpop.f32.mrb[5].mxu0 }
  0xe9   :  { %887 = vmatpush3.msra.mxu1 %v132_v22 }
  0xea   :  { %v137_v25 = vpop.f32.mrb[6].mxu0  ;;  %980 = vmatprep.subr.bf16.mxu1 %v1004_v0  ;;  %889 = vmatmul.mubr.msk.f32.vlgmr.msra.gmra.mrb[0].mxu1 %vm166_vm2, %v1111_v24 }
  0xeb   :  { %v866_v26 = vpop.f32.mrb[7].mxu0  ;;  %897 = vmatprep.mubr.msk.f32.mxu1 %vm1005_vm0, %v1006_v4 }
  0xee   :  { %v142_v27 = vpop.f32.mrb[8].mxu0 }
  0xef   :  { %v981_v28 = vpack.c.bf16 %v142_v27, %v137_v25  ;;  %v869_v29 = vpop.f32.mrb[9].mxu0 }
  0xf1   :  { %982 = vmatpush3.bf16.msra.mxu1 %v981_v28 }
  0xf2   :  { %v147_v30 = vpop.f32.mrb[10].mxu0  ;;  %895 = vmatprep.subr.mxu1 %v1006_v4 }
  0xf3   :  { %v872_v31 = vpop.f32.mrb[11].mxu0 }
  0xf5   :  { %896 = vmatpush3.msra.mxu1 %v147_v30 }
  0xf6   :  { %v152_v32 = vpop.f32.mrb[12].mxu0  ;;  %898 = vmatmul.mubr.msk.f32.vlgmr.msra.gmra.mrb[2].mxu1 %vm166_vm2, %v1111_v24  ;;  %983 = vmatprep.subr.bf16.mxu1 %v1004_v0 }
  0xf7   :  { %v875_v33 = vpop.f32.mrb[13].mxu0  ;;  %906 = vmatprep.mubr.msk.f32.mxu1 %vm1005_vm0, %v1006_v4 }
  0xfa   :  { %v157_v34 = vpop.f32.mrb[14].mxu0 }
  0xfb   :  { %v984_v35 = vpack.c.bf16 %v157_v34, %v152_v32  ;;  %v878_v36 = vpop.f32.mrb[15].mxu0 }
  0xfd   :  { %985 = vmatpush3.bf16.msra.mxu1 %v984_v35 }
  0xfe   :  { %v162_v37 = vpop.f32.mrb[16].mxu0  ;;  %904 = vmatprep.subr.mxu1 %v1006_v4 }
  0xff   :  { %v881_v38 = vpop.f32.mrb[17].mxu0 }
 0x101   :  { %905 = vmatpush3.msra.mxu1 %v162_v37 }
 0x102   :  { %907 = vmatmul.mubr.msk.f32.vlgmr.msra.gmra.mrb[4].mxu1 %vm166_vm2, %v1111_v24  ;;  %986 = vmatprep.subr.bf16.mxu1 %v1004_v0 }
 0x103   :  { %988 = vmatpush3.bf16.msra.mxu1 %v1039_v5  ;;  %917 = vmatprep.mubr.msk.f32.mxu1 %vm1005_vm0, %v1006_v4 }
 0x104   :  { %989 = vmatprep.subr.bf16.mxu1 %v1004_v0 }
 0x107   :  { %991 = vmatpush3.bf16.msra.mxu1 %v1048_v7 }
 0x10a   :  { %918 = vmatmul.mubr.msk.f32.vlgmr.msra.gmra.mrb[6].mxu1 %vm28_vm1, %v773_v39 }
 0x10b   :  { %920 = vmatprep.mubr.msk.f32.mxu1 %vm1005_vm0, %v1006_v4 }
 0x10e   :  { %921 = vmatmul.mubr.msk.f32.gmra.mrb[8].mxu1 %vm28_vm1, %v774_v40 }
 0x10f   :  { %923 = vmatprep.mubr.msk.f32.mxu1 %vm1005_vm0, %v1006_v4 }
 0x112   :  { %924 = vmatmul.mubr.msk.f32.gmra.mrb[10].mxu1 %vm28_vm1, %v775_v41 }
 0x113   :  { %926 = vmatprep.mubr.msk.f32.mxu1 %vm1005_vm0, %v1006_v4 }
 0x116   :  { %927 = vmatmul.mubr.msk.f32.gmra.mrb[12].mxu1 %vm28_vm1, %v776_v42 }
 0x117   :  { %929 = vmatprep.mubr.msk.f32.mxu1 %vm1005_vm0, %v1006_v4 }
 0x11a   :  { %930 = vmatmul.mubr.msk.f32.gmra.mrb[14].mxu1 %vm28_vm1, %v777_v43 }
 0x11b   :  { %932 = vmatprep.mubr.msk.f32.mxu1 %vm1005_vm0, %v1006_v4 }
 0x11e   :  { %933 = vmatmul.mubr.msk.f32.gmra.mrb[16].mxu1 %vm28_vm1, %v778_v44 }
 0x11f   :  { %935 = vmatprep.mubr.msk.f32.mxu1 %vm1005_vm0, %v1006_v4 }
 0x122   :  { %936 = vmatmul.mubr.msk.f32.gmra.mrb[18].mxu1 %vm28_vm1, %v779_v45 }
 0x123   :  { %938 = vmatprep.mubr.msk.f32.mxu1 %vm1005_vm0, %v1006_v4 }
 0x126   :  { %939 = vmatmul.mubr.msk.f32.gmra.mrb[20].mxu1 %vm28_vm1, %v780_v46 }
 0x127   :  { %941 = vmatprep.mubr.msk.f32.mxu1 %vm1005_vm0, %v1006_v4 }
 0x12a   :  { %942 = vmatmul.mubr.msk.f32.gmra.mrb[22].mxu1 %vm28_vm1, %v781_v47 }
 0x1bd   :  { %v236_v48 = vpop.f32.mrb[0].mxu1 }
 0x1be   :  { %v240_v49 = vmul.f32 4.366812, %v236_v48  ;;  %v890_v50 = vpop.f32.mrb[1].mxu1 }
 0x1c0   :  { %v241_v51 = vadd.f32 -2.117904, %v240_v49 }
 0x1c2   :  { %243 = vst.msk [vmem:[%s1227_s3] sm:$0xff] %vm242_vm3, %v241_v51 }
 0x1c9   :  { %v310_v52 = vpop.f32.mrb[2].mxu1 }
 0x1ca   :  { %v314_v53 = vmul.f32 4.464286, %v310_v52  ;;  %v899_v54 = vpop.f32.mrb[3].mxu1 }
 0x1cc   :  { %v315_v55 = vadd.f32 -2.0357144, %v314_v53 }
 0x1ce   :  { %316 = vst.msk [vmem:[%s1227_s3 + $0x8] sm:$0xff] %vm242_vm3, %v315_v55 }
 0x1d5   :  { %v383_v56 = vpop.f32.mrb[4].mxu1 }
 0x1d6   :  { %v387_v57 = vmul.f32 4.4444447, %v383_v56  ;;  %v908_v58 = vpop.f32.mrb[5].mxu1 }
 0x1d8   :  { %v388_v59 = vadd.f32 -1.8044444, %v387_v57 }
 0x1da   :  { %389 = vst.msk [vmem:[%s1227_s3 + $0x10] sm:$0xff] %vm242_vm3, %v388_v59 }
 0x1dd   :  { %v493_v60 = vpop.f32.mrb[6].mxu1 }
 0x1de   :  { %v919_v61 = vpop.f32.mrb[7].mxu1 }
 0x1e1   :  { %v498_v62 = vpop.f32.mrb[8].mxu1 }
 0x1e2   :  { %v993_v63 = vpack.c.bf16 %v498_v62, %v493_v60  ;;  %v922_v1 = vpop.f32.mrb[9].mxu1 }
 0x1e4   :  { %994 = vmatpush3.bf16.msra.mxu0 %v993_v63 }
 0x1e5   :  { %v503_v2 = vpop.f32.mrb[10].mxu1  ;;  %948 = vmatprep.subr.mxu0 %v1006_v4 }
 0x1e6   :  { %v925_v3 = vpop.f32.mrb[11].mxu1 }
 0x1e8   :  { %949 = vmatpush3.msra.mxu0 %v503_v2 }
 0x1e9   :  { %v508_v5 = vpop.f32.mrb[12].mxu1  ;;  %995 = vmatprep.subr.bf16.mxu0 %v1004_v0  ;;  %951 = vmatmul.mubr.msk.f32.vlgmr.msra.gmra.mrb[18].mxu0 %vm166_vm2, %v1111_v24 }
 0x1ea   :  { %v928_v6 = vpop.f32.mrb[13].mxu1  ;;  %959 = vmatprep.mubr.msk.f32.mxu0 %vm1005_vm0, %v1006_v4 }
 0x1ed   :  { %v513_v7 = vpop.f32.mrb[14].mxu1 }
 0x1ee   :  { %v996_v8 = vpack.c.bf16 %v513_v7, %v508_v5  ;;  %v931_v9 = vpop.f32.mrb[15].mxu1 }
 0x1f0   :  { %997 = vmatpush3.bf16.msra.mxu0 %v996_v8 }
 0x1f1   :  { %v518_v10 = vpop.f32.mrb[16].mxu1  ;;  %957 = vmatprep.subr.mxu0 %v1006_v4 }
 0x1f2   :  { %v934_v11 = vpop.f32.mrb[17].mxu1 }
 0x1f4   :  { %958 = vmatpush3.msra.mxu0 %v518_v10 }
 0x1f5   :  { %v523_v12 = vpop.f32.mrb[18].mxu1  ;;  %998 = vmatprep.subr.bf16.mxu0 %v1004_v0  ;;  %960 = vmatmul.mubr.msk.f32.vlgmr.msra.gmra.mrb[20].mxu0 %vm166_vm2, %v1111_v24 }
 0x1f6   :  { %v937_v13 = vpop.f32.mrb[19].mxu1  ;;  %968 = vmatprep.mubr.msk.f32.mxu0 %vm1005_vm0, %v1006_v4 }
 0x1f9   :  { %v528_v14 = vpop.f32.mrb[20].mxu1 }
 0x1fa   :  { %v999_v15 = vpack.c.bf16 %v528_v14, %v523_v12  ;;  %v940_v16 = vpop.f32.mrb[21].mxu1 }
 0x1fc   :  { %1000 = vmatpush3.bf16.msra.mxu0 %v999_v15 }
 0x1fd   :  { %v533_v17 = vpop.f32.mrb[22].mxu1  ;;  %966 = vmatprep.subr.mxu0 %v1006_v4 }
 0x1fe   :  { %v943_v18 = vpop.f32.mrb[23].mxu1 }
 0x200   :  { %967 = vmatpush3.msra.mxu0 %v533_v17 }
 0x201   :  { %969 = vmatmul.mubr.msk.f32.vlgmr.msra.gmra.mrb[22].mxu0 %vm166_vm2, %v1111_v24 }
 0x2bc   :  { %v603_v0 = vpop.f32.mrb[18].mxu0 }
 0x2bd   :  { %v607_v19 = vmul.f32 4.366812, %v603_v0  ;;  %v952_v20 = vpop.f32.mrb[19].mxu0 }
 0x2bf   :  { %v608_v21 = vadd.f32 -2.117904, %v607_v19 }
 0x2c1   :  { %792 = vst.msk [vmem:[%s1227_s3 + $0x18] sm:$0xff] %vm242_vm3, %v608_v21 }
 0x2c8   :  { %v677_v22 = vpop.f32.mrb[20].mxu0 }
 0x2c9   :  { %v681_v23 = vmul.f32 4.464286, %v677_v22  ;;  %v961_v25 = vpop.f32.mrb[21].mxu0 }
 0x2cb   :  { %v682_v26 = vadd.f32 -2.0357144, %v681_v23 }
 0x2cd   :  { %794 = vst.msk [vmem:[%s1227_s3 + $0x20] sm:$0xff] %vm242_vm3, %v682_v26 }
 0x2d4   :  { %v750_v4 = vpop.f32.mrb[22].mxu0 }
 0x2d5   :  { %v754_v24 = vmul.f32 4.4444447, %v750_v4  ;;  %v970_v27 = vpop.f32.mrb[23].mxu0 }
 0x2d7   :  { %v755_v28 = vadd.f32 -1.8044444, %v754_v24 }
 0x2d9   :  { %796 = vst.msk [vmem:[%s1227_s3 + $0x28] sm:$0xff] %vm242_vm3, %v755_v28 }

</bundles_post_ra>
